<compile_context>
chip_gen: v7x
topology: tpu7x:2x2x1
jax: 0.10.0
libtpu: 0.0.40
codegen_flags: <defaults>
</compile_context>

<pallas_src>
import jax
import jax.numpy as jnp
from jax.experimental import pallas as pl
from jax.experimental.pallas import tpu as pltpu


def _make_dense_block_kernel(H, W, cin0, growth, cov_num):
    HW = H * W

    def kernel(*refs):
        x_ref = refs[0]                                   # (Cin, HW)
        mask_ref = refs[1]                                # (9, HW) tap masks
        w_refs = refs[2:2 + cov_num]                      # layer l: (G, 9*cin_l)
        b_refs = refs[2 + cov_num:2 + 2 * cov_num]        # layer l: (G, 1)
        o_ref = refs[2 + 2 * cov_num]                     # (C_total, HW)

        # Input channels go straight into the output block: o_ref doubles as
        # the VMEM-resident growing feature map (dense "concat" = slice write),
        # so there is no epilogue copy and no scratch buffer.
        o_ref[pl.ds(0, cin0), :] = x_ref[...]

        # Per-tap validity masks for the implicit zero padding of the "same"
        # conv; loaded once and reused by every layer.
        tap_masks = [mask_ref[pl.ds(t, 1), :] for t in range(9)]

        def shift_flat(fs, d):
            # g[:, s] = fs[:, s + d] for in-range s + d, zero at the ends.
            if d == 0:
                return fs
            pad = jnp.zeros((fs.shape[0], abs(d)), fs.dtype)
            if d > 0:
                return jnp.concatenate([fs[:, d:], pad], axis=1)
            return jnp.concatenate([pad, fs[:, :d]], axis=1)

        c_off = cin0
        for layer in range(cov_num):          # static unroll, cov_num is small
            cin_l = cin0 + layer * growth
            # Real cin only -- no zero-padded channels, no wasted MXU work.
            fs = o_ref[pl.ds(0, cin_l), :]                 # (cin_l, HW)

            # Build the 9-tap patch slab and contract it in ONE MXU dot.
            slabs = []
            t = 0
            for ky in range(3):
                for kx in range(3):
                    d = (ky - 1) * W + (kx - 1)
                    slabs.append(shift_flat(fs, d) * tap_masks[t])
                    t += 1
            slab = jnp.concatenate(slabs, axis=0)          # (9*cin_l, HW)

            y = jnp.dot(w_refs[layer][...], slab,
                        preferred_element_type=jnp.float32)   # (G, HW)
            y = jnp.maximum(y + b_refs[layer][...], 0.0)
            o_ref[pl.ds(c_off, growth), :] = y.astype(o_ref.dtype)
            c_off += growth

    return kernel


def dense_block_pallas(x_nchw, params, growth_rate):
    """Fused DenseBlock. params: list of (w: (3,3,cin_l,G), b: (G,))."""
    N, Cin, H, W = x_nchw.shape
    cov_num = len(params)
    c_total = Cin + cov_num * growth_rate
    HW = H * W

    # Channel-major, flattened-spatial layout: lanes carry H*W (lane-dense),
    # and it matches NCHW I/O so only free reshapes are needed on the host.
    x_flat = x_nchw.reshape(N, Cin, HW).astype(jnp.float32)

    # Static per-tap validity masks for the "same" zero padding.
    s = jnp.arange(HW)
    row, col = s // W, s % W
    masks = []
    for ky in range(3):
        for kx in range(3):
            r, c = row + (ky - 1), col + (kx - 1)
            masks.append(((r >= 0) & (r < H) & (c >= 0) & (c < W)
                          ).astype(jnp.float32))
    mask_all = jnp.stack(masks, axis=0)                    # (9, HW)

    # Per-layer weights reshaped to (G, 9*cin_l) with K ordered (tap, channel)
    # to match the in-kernel slab; contraction uses each layer's REAL cin.
    w_mats, b_mats = [], []
    for (w, b) in params:
        cin_l = w.shape[2]
        w_mats.append(jnp.asarray(w, jnp.float32)
                      .reshape(9 * cin_l, growth_rate).T)   # (G, 9*cin_l)
        b_mats.append(jnp.asarray(b, jnp.float32).reshape(growth_rate, 1))

    kernel = _make_dense_block_kernel(H, W, Cin, growth_rate, cov_num)

    # Weights/biases/masks are tiny and have constant index maps; their
    # double-buffers cost a few KB here (use pl.Buffered(1) if they ever grow).
    in_specs = [pl.BlockSpec((None, Cin, HW), lambda n: (n, 0, 0)),
                pl.BlockSpec((9, HW), lambda n: (0, 0))]
    for wm in w_mats:
        in_specs.append(pl.BlockSpec(wm.shape, lambda n: (0, 0)))
    for bm in b_mats:
        in_specs.append(pl.BlockSpec(bm.shape, lambda n: (0, 0)))

    out_flat = pl.pallas_call(
        kernel,
        out_shape=jax.ShapeDtypeStruct((N, c_total, HW), jnp.float32),
        grid_spec=pltpu.PrefetchScalarGridSpec(
            num_scalar_prefetch=0,
            grid=(N,),
            in_specs=in_specs,
            out_specs=pl.BlockSpec((None, c_total, HW), lambda n: (n, 0, 0)),
        ),
        compiler_params=pltpu.CompilerParams(
            dimension_semantics=("parallel",)),
    )(x_flat, mask_all, *w_mats, *b_mats)

    return out_flat.reshape(N, c_total, H, W)


class DenseBlockPallas:
    """Pallas port of DenseBlock: cov_num blocks of conv3x3+ReLU, dense concat."""

    def __init__(self, cov_num, input_channel, growth_rate, key):
        self.cov_num = cov_num
        self.growth_rate = growth_rate
        self.output_channel = cov_num * growth_rate + input_channel
        self.params = []
        cin = input_channel
        for _ in range(cov_num):
            key, wk, bk = jax.random.split(key, 3)
            fan_in = float(cin * 9)
            bound = 1.0 / (fan_in ** 0.5)  # PyTorch-default-style uniform init
            w = jax.random.uniform(
                wk, (3, 3, cin, growth_rate), jnp.float32, -bound, bound)
            b = jax.random.uniform(
                bk, (growth_rate,), jnp.float32, -bound, bound)
            self.params.append((w, b))
            cin += growth_rate

    def __call__(self, x_nchw):
        # Input / output follow PyTorch NCHW; internal compute is (C, H*W).
        return dense_block_pallas(x_nchw, self.params, self.growth_rate)


# ---------------- pure-JAX reference (for correctness check) ----------------
def _conv3x3_relu_ref(x_nhwc, w, b):
    y = jax.lax.conv_general_dilated(
        x_nhwc, w, window_strides=(1, 1), padding="SAME",
        dimension_numbers=("NHWC", "HWIO", "NHWC"))
    return jnp.maximum(y + b, 0.0)


def _dense_block_ref(x_nchw, params):
    result = jnp.transpose(x_nchw, (0, 2, 3, 1))
    for (w, b) in params:
        y = _conv3x3_relu_ref(result, w, b)
        result = jnp.concatenate([result, y], axis=-1)
    return jnp.transpose(result, (0, 3, 1, 2))


if __name__ == "__main__":
    key = jax.random.PRNGKey(0)
    key, xk, pk = jax.random.split(key, 3)

    # Small shapes consistent with the module's forward (NCHW input).
    N, C, H, W = 2, 4, 16, 16
    cov_num, growth_rate = 3, 4

    x = jax.random.normal(xk, (N, C, H, W), jnp.float32)

    block = DenseBlockPallas(cov_num, C, growth_rate, pk)

    out = jax.block_until_ready(block(x))
    assert out.shape == (N, block.output_channel, H, W), out.shape

    ref = jax.block_until_ready(_dense_block_ref(x, block.params))
    assert jnp.allclose(out, ref, atol=1e-3, rtol=1e-3), (
        float(jnp.max(jnp.abs(out - ref))))

    print("KERNEL_OK")
</pallas_src>

<mosaic_0001>
module attributes {stable_mosaic.version = 11 : i64} {
  func.func @kernel(%arg0: i32, %arg1: memref<1x4x256xf32, #tpu.memory_space<vmem>>, %arg2: memref<9x256xf32, #tpu.memory_space<vmem>>, %arg3: memref<4x36xf32, #tpu.memory_space<vmem>>, %arg4: memref<4x72xf32, #tpu.memory_space<vmem>>, %arg5: memref<4x108xf32, #tpu.memory_space<vmem>>, %arg6: memref<4x1xf32, #tpu.memory_space<vmem>>, %arg7: memref<4x1xf32, #tpu.memory_space<vmem>>, %arg8: memref<4x1xf32, #tpu.memory_space<vmem>>, %arg9: memref<1x16x256xf32, #tpu.memory_space<vmem>>) attributes {dimension_semantics = [#tpu.dimension_semantics<parallel>], iteration_bounds = array<i64: 2>, scalar_prefetch = 0 : i64, scratch_operands = 0 : i64, tpu.core_type = #tpu.core_type<tc>, window_params = [{transform_indices = @transform_0, window_bounds = array<i64: 1, 4, 256>}, {pipeline_mode = #tpu.pipeline_mode<synchronous>, transform_indices = @transform_1, window_bounds = array<i64: 9, 256>}, {pipeline_mode = #tpu.pipeline_mode<synchronous>, transform_indices = @transform_2, window_bounds = array<i64: 4, 36>}, {pipeline_mode = #tpu.pipeline_mode<synchronous>, transform_indices = @transform_3, window_bounds = array<i64: 4, 72>}, {pipeline_mode = #tpu.pipeline_mode<synchronous>, transform_indices = @transform_4, window_bounds = array<i64: 4, 108>}, {pipeline_mode = #tpu.pipeline_mode<synchronous>, transform_indices = @transform_5, window_bounds = array<i64: 4, 1>}, {pipeline_mode = #tpu.pipeline_mode<synchronous>, transform_indices = @transform_6, window_bounds = array<i64: 4, 1>}, {pipeline_mode = #tpu.pipeline_mode<synchronous>, transform_indices = @transform_7, window_bounds = array<i64: 4, 1>}, {transform_indices = @transform_8, window_bounds = array<i64: 1, 16, 256>}]} {
    %c0 = arith.constant 0 : index
    %c0_0 = arith.constant 0 : index
    %c0_1 = arith.constant 0 : index
    %0 = vector.load %arg1[%c0, %c0_0, %c0_1] : memref<1x4x256xf32, #tpu.memory_space<vmem>>, vector<1x4x256xf32>
    %1 = vector.shape_cast %0 : vector<1x4x256xf32> to vector<4x256xf32>
    %c0_2 = arith.constant 0 : index
    %c0_3 = arith.constant 0 : index
    %c0_4 = arith.constant 0 : index
    %2 = vector.load %arg9[%c0_2, %c0_3, %c0_4] : memref<1x16x256xf32, #tpu.memory_space<vmem>>, vector<1x4x256xf32>
    %3 = vector.shape_cast %2 : vector<1x4x256xf32> to vector<4x256xf32>
    %4 = vector.shape_cast %1 : vector<4x256xf32> to vector<1x4x256xf32>
    tpu.vector_store %arg9[%c0_2, %c0_3, %c0_4], %4 {strides = array<i32>} : memref<1x16x256xf32, #tpu.memory_space<vmem>>, vector<1x4x256xf32>,
    %c0_5 = arith.constant 0 : index
    %c0_6 = arith.constant 0 : index
    %5 = vector.load %arg2[%c0_5, %c0_6] : memref<9x256xf32, #tpu.memory_space<vmem>>, vector<1x256xf32>
    %c1 = arith.constant 1 : index
    %c0_7 = arith.constant 0 : index
    %6 = vector.load %arg2[%c1, %c0_7] : memref<9x256xf32, #tpu.memory_space<vmem>>, vector<1x256xf32>
    %c2 = arith.constant 2 : index
    %c0_8 = arith.constant 0 : index
    %7 = vector.load %arg2[%c2, %c0_8] : memref<9x256xf32, #tpu.memory_space<vmem>>, vector<1x256xf32>
    %c3 = arith.constant 3 : index
    %c0_9 = arith.constant 0 : index
    %8 = vector.load %arg2[%c3, %c0_9] : memref<9x256xf32, #tpu.memory_space<vmem>>, vector<1x256xf32>
    %c4 = arith.constant 4 : index
    %c0_10 = arith.constant 0 : index
    %9 = vector.load %arg2[%c4, %c0_10] : memref<9x256xf32, #tpu.memory_space<vmem>>, vector<1x256xf32>
    %c5 = arith.constant 5 : index
    %c0_11 = arith.constant 0 : index
    %10 = vector.load %arg2[%c5, %c0_11] : memref<9x256xf32, #tpu.memory_space<vmem>>, vector<1x256xf32>
    %c6 = arith.constant 6 : index
    %c0_12 = arith.constant 0 : index
    %11 = vector.load %arg2[%c6, %c0_12] : memref<9x256xf32, #tpu.memory_space<vmem>>, vector<1x256xf32>
    %c7 = arith.constant 7 : index
    %c0_13 = arith.constant 0 : index
    %12 = vector.load %arg2[%c7, %c0_13] : memref<9x256xf32, #tpu.memory_space<vmem>>, vector<1x256xf32>
    %c8 = arith.constant 8 : index
    %c0_14 = arith.constant 0 : index
    %13 = vector.load %arg2[%c8, %c0_14] : memref<9x256xf32, #tpu.memory_space<vmem>>, vector<1x256xf32>
    %c0_15 = arith.constant 0 : index
    %c0_16 = arith.constant 0 : index
    %c0_17 = arith.constant 0 : index
    %14 = vector.load %arg9[%c0_15, %c0_16, %c0_17] : memref<1x16x256xf32, #tpu.memory_space<vmem>>, vector<1x4x256xf32>
    %15 = vector.shape_cast %14 : vector<1x4x256xf32> to vector<4x256xf32>
    %cst = arith.constant 0.000000e+00 : f32
    %16 = vector.broadcast %cst : f32 to vector<4x17xf32>
    %17 = vector.extract_strided_slice %15 {offsets = [0, 0], sizes = [4, 239], strides = [1, 1]} : vector<4x256xf32> to vector<4x239xf32>
    %18 = tpu.concatenate %16, %17 in 1 : vector<4x17xf32>, vector<4x239xf32> -> vector<4x256xf32>
    %19 = vector.broadcast %5 : vector<1x256xf32> to vector<4x256xf32>
    %20 = arith.mulf %18, %19 : vector<4x256xf32>
    %cst_18 = arith.constant 0.000000e+00 : f32
    %21 = vector.broadcast %cst_18 : f32 to vector<4x16xf32>
    %22 = vector.extract_strided_slice %15 {offsets = [0, 0], sizes = [4, 240], strides = [1, 1]} : vector<4x256xf32> to vector<4x240xf32>
    %23 = tpu.concatenate %21, %22 in 1 : vector<4x16xf32>, vector<4x240xf32> -> vector<4x256xf32>
    %24 = vector.broadcast %6 : vector<1x256xf32> to vector<4x256xf32>
    %25 = arith.mulf %23, %24 : vector<4x256xf32>
    %cst_19 = arith.constant 0.000000e+00 : f32
    %26 = vector.broadcast %cst_19 : f32 to vector<4x15xf32>
    %27 = vector.extract_strided_slice %15 {offsets = [0, 0], sizes = [4, 241], strides = [1, 1]} : vector<4x256xf32> to vector<4x241xf32>
    %28 = tpu.concatenate %26, %27 in 1 : vector<4x15xf32>, vector<4x241xf32> -> vector<4x256xf32>
    %29 = vector.broadcast %7 : vector<1x256xf32> to vector<4x256xf32>
    %30 = arith.mulf %28, %29 : vector<4x256xf32>
    %cst_20 = arith.constant 0.000000e+00 : f32
    %31 = vector.broadcast %cst_20 : f32 to vector<4x1xf32>
    %32 = vector.extract_strided_slice %15 {offsets = [0, 0], sizes = [4, 255], strides = [1, 1]} : vector<4x256xf32> to vector<4x255xf32>
    %33 = tpu.concatenate %31, %32 in 1 : vector<4x1xf32>, vector<4x255xf32> -> vector<4x256xf32>
    %34 = vector.broadcast %8 : vector<1x256xf32> to vector<4x256xf32>
    %35 = arith.mulf %33, %34 : vector<4x256xf32>
    %36 = vector.broadcast %9 : vector<1x256xf32> to vector<4x256xf32>
    %37 = arith.mulf %15, %36 : vector<4x256xf32>
    %cst_21 = arith.constant 0.000000e+00 : f32
    %38 = vector.broadcast %cst_21 : f32 to vector<4x1xf32>
    %39 = vector.extract_strided_slice %15 {offsets = [0, 1], sizes = [4, 255], strides = [1, 1]} : vector<4x256xf32> to vector<4x255xf32>
    %40 = tpu.concatenate %39, %38 in 1 : vector<4x255xf32>, vector<4x1xf32> -> vector<4x256xf32>
    %41 = vector.broadcast %10 : vector<1x256xf32> to vector<4x256xf32>
    %42 = arith.mulf %40, %41 : vector<4x256xf32>
    %cst_22 = arith.constant 0.000000e+00 : f32
    %43 = vector.broadcast %cst_22 : f32 to vector<4x15xf32>
    %44 = vector.extract_strided_slice %15 {offsets = [0, 15], sizes = [4, 241], strides = [1, 1]} : vector<4x256xf32> to vector<4x241xf32>
    %45 = tpu.concatenate %44, %43 in 1 : vector<4x241xf32>, vector<4x15xf32> -> vector<4x256xf32>
    %46 = vector.broadcast %11 : vector<1x256xf32> to vector<4x256xf32>
    %47 = arith.mulf %45, %46 : vector<4x256xf32>
    %cst_23 = arith.constant 0.000000e+00 : f32
    %48 = vector.broadcast %cst_23 : f32 to vector<4x16xf32>
    %49 = vector.extract_strided_slice %15 {offsets = [0, 16], sizes = [4, 240], strides = [1, 1]} : vector<4x256xf32> to vector<4x240xf32>
    %50 = tpu.concatenate %49, %48 in 1 : vector<4x240xf32>, vector<4x16xf32> -> vector<4x256xf32>
    %51 = vector.broadcast %12 : vector<1x256xf32> to vector<4x256xf32>
    %52 = arith.mulf %50, %51 : vector<4x256xf32>
    %cst_24 = arith.constant 0.000000e+00 : f32
    %53 = vector.broadcast %cst_24 : f32 to vector<4x17xf32>
    %54 = vector.extract_strided_slice %15 {offsets = [0, 17], sizes = [4, 239], strides = [1, 1]} : vector<4x256xf32> to vector<4x239xf32>
    %55 = tpu.concatenate %54, %53 in 1 : vector<4x239xf32>, vector<4x17xf32> -> vector<4x256xf32>
    %56 = vector.broadcast %13 : vector<1x256xf32> to vector<4x256xf32>
    %57 = arith.mulf %55, %56 : vector<4x256xf32>
    %58 = tpu.concatenate %20, %25, %30, %35, %37, %42, %47, %52, %57 in 0 : vector<4x256xf32>, vector<4x256xf32>, vector<4x256xf32>, vector<4x256xf32>, vector<4x256xf32>, vector<4x256xf32>, vector<4x256xf32>, vector<4x256xf32>, vector<4x256xf32> -> vector<36x256xf32>
    %c0_25 = arith.constant 0 : index
    %c0_26 = arith.constant 0 : index
    %59 = vector.load %arg3[%c0_25, %c0_26] : memref<4x36xf32, #tpu.memory_space<vmem>>, vector<4x36xf32>
    %cst_27 = arith.constant dense<0.000000e+00> : vector<4x256xf32>
    %60 = tpu.matmul %59, %58, %cst_27 {dimension_numbers = #tpu.dot_dimension_numbers<[1], [0], [0], [1], [0, 0, 1, 1], [], []>} : vector<4x36xf32>, vector<36x256xf32>, vector<4x256xf32> -> vector<4x256xf32>
    %c0_28 = arith.constant 0 : index
    %c0_29 = arith.constant 0 : index
    %61 = vector.load %arg6[%c0_28, %c0_29] : memref<4x1xf32, #tpu.memory_space<vmem>>, vector<4x1xf32>
    %62 = vector.broadcast %61 : vector<4x1xf32> to vector<4x256xf32>
    %63 = arith.addf %60, %62 : vector<4x256xf32>
    %cst_30 = arith.constant 0.000000e+00 : f32
    %64 = vector.broadcast %cst_30 : f32 to vector<4x256xf32>
    %65 = arith.maximumf %63, %64 : vector<4x256xf32>
    %c0_31 = arith.constant 0 : index
    %c4_32 = arith.constant 4 : index
    %c0_33 = arith.constant 0 : index
    %66 = vector.load %arg9[%c0_31, %c4_32, %c0_33] : memref<1x16x256xf32, #tpu.memory_space<vmem>>, vector<1x4x256xf32>
    %67 = vector.shape_cast %66 : vector<1x4x256xf32> to vector<4x256xf32>
    %68 = vector.shape_cast %65 : vector<4x256xf32> to vector<1x4x256xf32>
    tpu.vector_store %arg9[%c0_31, %c4_32, %c0_33], %68 {strides = array<i32>} : memref<1x16x256xf32, #tpu.memory_space<vmem>>, vector<1x4x256xf32>,
    %c0_34 = arith.constant 0 : index
    %c0_35 = arith.constant 0 : index
    %c0_36 = arith.constant 0 : index
    %69 = vector.load %arg9[%c0_34, %c0_35, %c0_36] : memref<1x16x256xf32, #tpu.memory_space<vmem>>, vector<1x8x256xf32>
    %70 = vector.shape_cast %69 : vector<1x8x256xf32> to vector<8x256xf32>
    %cst_37 = arith.constant 0.000000e+00 : f32
    %71 = vector.broadcast %cst_37 : f32 to vector<8x17xf32>
    %72 = vector.extract_strided_slice %70 {offsets = [0, 0], sizes = [8, 239], strides = [1, 1]} : vector<8x256xf32> to vector<8x239xf32>
    %73 = tpu.concatenate %71, %72 in 1 : vector<8x17xf32>, vector<8x239xf32> -> vector<8x256xf32>
    %74 = vector.broadcast %5 : vector<1x256xf32> to vector<8x256xf32>
    %75 = arith.mulf %73, %74 : vector<8x256xf32>
    %cst_38 = arith.constant 0.000000e+00 : f32
    %76 = vector.broadcast %cst_38 : f32 to vector<8x16xf32>
    %77 = vector.extract_strided_slice %70 {offsets = [0, 0], sizes = [8, 240], strides = [1, 1]} : vector<8x256xf32> to vector<8x240xf32>
    %78 = tpu.concatenate %76, %77 in 1 : vector<8x16xf32>, vector<8x240xf32> -> vector<8x256xf32>
    %79 = vector.broadcast %6 : vector<1x256xf32> to vector<8x256xf32>
    %80 = arith.mulf %78, %79 : vector<8x256xf32>
    %cst_39 = arith.constant 0.000000e+00 : f32
    %81 = vector.broadcast %cst_39 : f32 to vector<8x15xf32>
    %82 = vector.extract_strided_slice %70 {offsets = [0, 0], sizes = [8, 241], strides = [1, 1]} : vector<8x256xf32> to vector<8x241xf32>
    %83 = tpu.concatenate %81, %82 in 1 : vector<8x15xf32>, vector<8x241xf32> -> vector<8x256xf32>
    %84 = vector.broadcast %7 : vector<1x256xf32> to vector<8x256xf32>
    %85 = arith.mulf %83, %84 : vector<8x256xf32>
    %cst_40 = arith.constant 0.000000e+00 : f32
    %86 = vector.broadcast %cst_40 : f32 to vector<8x1xf32>
    %87 = vector.extract_strided_slice %70 {offsets = [0, 0], sizes = [8, 255], strides = [1, 1]} : vector<8x256xf32> to vector<8x255xf32>
    %88 = tpu.concatenate %86, %87 in 1 : vector<8x1xf32>, vector<8x255xf32> -> vector<8x256xf32>
    %89 = vector.broadcast %8 : vector<1x256xf32> to vector<8x256xf32>
    %90 = arith.mulf %88, %89 : vector<8x256xf32>
    %91 = vector.broadcast %9 : vector<1x256xf32> to vector<8x256xf32>
    %92 = arith.mulf %70, %91 : vector<8x256xf32>
    %cst_41 = arith.constant 0.000000e+00 : f32
    %93 = vector.broadcast %cst_41 : f32 to vector<8x1xf32>
    %94 = vector.extract_strided_slice %70 {offsets = [0, 1], sizes = [8, 255], strides = [1, 1]} : vector<8x256xf32> to vector<8x255xf32>
    %95 = tpu.concatenate %94, %93 in 1 : vector<8x255xf32>, vector<8x1xf32> -> vector<8x256xf32>
    %96 = vector.broadcast %10 : vector<1x256xf32> to vector<8x256xf32>
    %97 = arith.mulf %95, %96 : vector<8x256xf32>
    %cst_42 = arith.constant 0.000000e+00 : f32
    %98 = vector.broadcast %cst_42 : f32 to vector<8x15xf32>
    %99 = vector.extract_strided_slice %70 {offsets = [0, 15], sizes = [8, 241], strides = [1, 1]} : vector<8x256xf32> to vector<8x241xf32>
    %100 = tpu.concatenate %99, %98 in 1 : vector<8x241xf32>, vector<8x15xf32> -> vector<8x256xf32>
    %101 = vector.broadcast %11 : vector<1x256xf32> to vector<8x256xf32>
    %102 = arith.mulf %100, %101 : vector<8x256xf32>
    %cst_43 = arith.constant 0.000000e+00 : f32
    %103 = vector.broadcast %cst_43 : f32 to vector<8x16xf32>
    %104 = vector.extract_strided_slice %70 {offsets = [0, 16], sizes = [8, 240], strides = [1, 1]} : vector<8x256xf32> to vector<8x240xf32>
    %105 = tpu.concatenate %104, %103 in 1 : vector<8x240xf32>, vector<8x16xf32> -> vector<8x256xf32>
    %106 = vector.broadcast %12 : vector<1x256xf32> to vector<8x256xf32>
    %107 = arith.mulf %105, %106 : vector<8x256xf32>
    %cst_44 = arith.constant 0.000000e+00 : f32
    %108 = vector.broadcast %cst_44 : f32 to vector<8x17xf32>
    %109 = vector.extract_strided_slice %70 {offsets = [0, 17], sizes = [8, 239], strides = [1, 1]} : vector<8x256xf32> to vector<8x239xf32>
    %110 = tpu.concatenate %109, %108 in 1 : vector<8x239xf32>, vector<8x17xf32> -> vector<8x256xf32>
    %111 = vector.broadcast %13 : vector<1x256xf32> to vector<8x256xf32>
    %112 = arith.mulf %110, %111 : vector<8x256xf32>
    %113 = tpu.concatenate %75, %80, %85, %90, %92, %97, %102, %107, %112 in 0 : vector<8x256xf32>, vector<8x256xf32>, vector<8x256xf32>, vector<8x256xf32>, vector<8x256xf32>, vector<8x256xf32>, vector<8x256xf32>, vector<8x256xf32>, vector<8x256xf32> -> vector<72x256xf32>
    %c0_45 = arith.constant 0 : index
    %c0_46 = arith.constant 0 : index
    %114 = vector.load %arg4[%c0_45, %c0_46] : memref<4x72xf32, #tpu.memory_space<vmem>>, vector<4x72xf32>
    %cst_47 = arith.constant dense<0.000000e+00> : vector<4x256xf32>
    %115 = tpu.matmul %114, %113, %cst_47 {dimension_numbers = #tpu.dot_dimension_numbers<[1], [0], [0], [1], [0, 0, 1, 1], [], []>} : vector<4x72xf32>, vector<72x256xf32>, vector<4x256xf32> -> vector<4x256xf32>
    %c0_48 = arith.constant 0 : index
    %c0_49 = arith.constant 0 : index
    %116 = vector.load %arg7[%c0_48, %c0_49] : memref<4x1xf32, #tpu.memory_space<vmem>>, vector<4x1xf32>
    %117 = vector.broadcast %116 : vector<4x1xf32> to vector<4x256xf32>
    %118 = arith.addf %115, %117 : vector<4x256xf32>
    %cst_50 = arith.constant 0.000000e+00 : f32
    %119 = vector.broadcast %cst_50 : f32 to vector<4x256xf32>
    %120 = arith.maximumf %118, %119 : vector<4x256xf32>
    %c0_51 = arith.constant 0 : index
    %c8_52 = arith.constant 8 : index
    %c0_53 = arith.constant 0 : index
    %121 = vector.load %arg9[%c0_51, %c8_52, %c0_53] : memref<1x16x256xf32, #tpu.memory_space<vmem>>, vector<1x4x256xf32>
    %122 = vector.shape_cast %121 : vector<1x4x256xf32> to vector<4x256xf32>
    %123 = vector.shape_cast %120 : vector<4x256xf32> to vector<1x4x256xf32>
    tpu.vector_store %arg9[%c0_51, %c8_52, %c0_53], %123 {strides = array<i32>} : memref<1x16x256xf32, #tpu.memory_space<vmem>>, vector<1x4x256xf32>,
    %c0_54 = arith.constant 0 : index
    %c0_55 = arith.constant 0 : index
    %c0_56 = arith.constant 0 : index
    %124 = vector.load %arg9[%c0_54, %c0_55, %c0_56] : memref<1x16x256xf32, #tpu.memory_space<vmem>>, vector<1x12x256xf32>
    %125 = vector.shape_cast %124 : vector<1x12x256xf32> to vector<12x256xf32>
    %cst_57 = arith.constant 0.000000e+00 : f32
    %126 = vector.broadcast %cst_57 : f32 to vector<12x17xf32>
    %127 = vector.extract_strided_slice %125 {offsets = [0, 0], sizes = [12, 239], strides = [1, 1]} : vector<12x256xf32> to vector<12x239xf32>
    %128 = tpu.concatenate %126, %127 in 1 : vector<12x17xf32>, vector<12x239xf32> -> vector<12x256xf32>
    %129 = vector.broadcast %5 : vector<1x256xf32> to vector<12x256xf32>
    %130 = arith.mulf %128, %129 : vector<12x256xf32>
    %cst_58 = arith.constant 0.000000e+00 : f32
    %131 = vector.broadcast %cst_58 : f32 to vector<12x16xf32>
    %132 = vector.extract_strided_slice %125 {offsets = [0, 0], sizes = [12, 240], strides = [1, 1]} : vector<12x256xf32> to vector<12x240xf32>
    %133 = tpu.concatenate %131, %132 in 1 : vector<12x16xf32>, vector<12x240xf32> -> vector<12x256xf32>
    %134 = vector.broadcast %6 : vector<1x256xf32> to vector<12x256xf32>
    %135 = arith.mulf %133, %134 : vector<12x256xf32>
    %cst_59 = arith.constant 0.000000e+00 : f32
    %136 = vector.broadcast %cst_59 : f32 to vector<12x15xf32>
    %137 = vector.extract_strided_slice %125 {offsets = [0, 0], sizes = [12, 241], strides = [1, 1]} : vector<12x256xf32> to vector<12x241xf32>
    %138 = tpu.concatenate %136, %137 in 1 : vector<12x15xf32>, vector<12x241xf32> -> vector<12x256xf32>
    %139 = vector.broadcast %7 : vector<1x256xf32> to vector<12x256xf32>
    %140 = arith.mulf %138, %139 : vector<12x256xf32>
    %cst_60 = arith.constant 0.000000e+00 : f32
    %141 = vector.broadcast %cst_60 : f32 to vector<12x1xf32>
    %142 = vector.extract_strided_slice %125 {offsets = [0, 0], sizes = [12, 255], strides = [1, 1]} : vector<12x256xf32> to vector<12x255xf32>
    %143 = tpu.concatenate %141, %142 in 1 : vector<12x1xf32>, vector<12x255xf32> -> vector<12x256xf32>
    %144 = vector.broadcast %8 : vector<1x256xf32> to vector<12x256xf32>
    %145 = arith.mulf %143, %144 : vector<12x256xf32>
    %146 = vector.broadcast %9 : vector<1x256xf32> to vector<12x256xf32>
    %147 = arith.mulf %125, %146 : vector<12x256xf32>
    %cst_61 = arith.constant 0.000000e+00 : f32
    %148 = vector.broadcast %cst_61 : f32 to vector<12x1xf32>
    %149 = vector.extract_strided_slice %125 {offsets = [0, 1], sizes = [12, 255], strides = [1, 1]} : vector<12x256xf32> to vector<12x255xf32>
    %150 = tpu.concatenate %149, %148 in 1 : vector<12x255xf32>, vector<12x1xf32> -> vector<12x256xf32>
    %151 = vector.broadcast %10 : vector<1x256xf32> to vector<12x256xf32>
    %152 = arith.mulf %150, %151 : vector<12x256xf32>
    %cst_62 = arith.constant 0.000000e+00 : f32
    %153 = vector.broadcast %cst_62 : f32 to vector<12x15xf32>
    %154 = vector.extract_strided_slice %125 {offsets = [0, 15], sizes = [12, 241], strides = [1, 1]} : vector<12x256xf32> to vector<12x241xf32>
    %155 = tpu.concatenate %154, %153 in 1 : vector<12x241xf32>, vector<12x15xf32> -> vector<12x256xf32>
    %156 = vector.broadcast %11 : vector<1x256xf32> to vector<12x256xf32>
    %157 = arith.mulf %155, %156 : vector<12x256xf32>
    %cst_63 = arith.constant 0.000000e+00 : f32
    %158 = vector.broadcast %cst_63 : f32 to vector<12x16xf32>
    %159 = vector.extract_strided_slice %125 {offsets = [0, 16], sizes = [12, 240], strides = [1, 1]} : vector<12x256xf32> to vector<12x240xf32>
    %160 = tpu.concatenate %159, %158 in 1 : vector<12x240xf32>, vector<12x16xf32> -> vector<12x256xf32>
    %161 = vector.broadcast %12 : vector<1x256xf32> to vector<12x256xf32>
    %162 = arith.mulf %160, %161 : vector<12x256xf32>
    %cst_64 = arith.constant 0.000000e+00 : f32
    %163 = vector.broadcast %cst_64 : f32 to vector<12x17xf32>
    %164 = vector.extract_strided_slice %125 {offsets = [0, 17], sizes = [12, 239], strides = [1, 1]} : vector<12x256xf32> to vector<12x239xf32>
    %165 = tpu.concatenate %164, %163 in 1 : vector<12x239xf32>, vector<12x17xf32> -> vector<12x256xf32>
    %166 = vector.broadcast %13 : vector<1x256xf32> to vector<12x256xf32>
    %167 = arith.mulf %165, %166 : vector<12x256xf32>
    %168 = tpu.concatenate %130, %135, %140, %145, %147, %152, %157, %162, %167 in 0 : vector<12x256xf32>, vector<12x256xf32>, vector<12x256xf32>, vector<12x256xf32>, vector<12x256xf32>, vector<12x256xf32>, vector<12x256xf32>, vector<12x256xf32>, vector<12x256xf32> -> vector<108x256xf32>
    %c0_65 = arith.constant 0 : index
    %c0_66 = arith.constant 0 : index
    %169 = vector.load %arg5[%c0_65, %c0_66] : memref<4x108xf32, #tpu.memory_space<vmem>>, vector<4x108xf32>
    %cst_67 = arith.constant dense<0.000000e+00> : vector<4x256xf32>
    %170 = tpu.matmul %169, %168, %cst_67 {dimension_numbers = #tpu.dot_dimension_numbers<[1], [0], [0], [1], [0, 0, 1, 1], [], []>} : vector<4x108xf32>, vector<108x256xf32>, vector<4x256xf32> -> vector<4x256xf32>
    %c0_68 = arith.constant 0 : index
    %c0_69 = arith.constant 0 : index
    %171 = vector.load %arg8[%c0_68, %c0_69] : memref<4x1xf32, #tpu.memory_space<vmem>>, vector<4x1xf32>
    %172 = vector.broadcast %171 : vector<4x1xf32> to vector<4x256xf32>
    %173 = arith.addf %170, %172 : vector<4x256xf32>
    %cst_70 = arith.constant 0.000000e+00 : f32
    %174 = vector.broadcast %cst_70 : f32 to vector<4x256xf32>
    %175 = arith.maximumf %173, %174 : vector<4x256xf32>
    %c0_71 = arith.constant 0 : index
    %c12 = arith.constant 12 : index
    %c0_72 = arith.constant 0 : index
    %176 = vector.load %arg9[%c0_71, %c12, %c0_72] : memref<1x16x256xf32, #tpu.memory_space<vmem>>, vector<1x4x256xf32>
    %177 = vector.shape_cast %176 : vector<1x4x256xf32> to vector<4x256xf32>
    %178 = vector.shape_cast %175 : vector<4x256xf32> to vector<1x4x256xf32>
    tpu.vector_store %arg9[%c0_71, %c12, %c0_72], %178 {strides = array<i32>} : memref<1x16x256xf32, #tpu.memory_space<vmem>>, vector<1x4x256xf32>,
    return
  }
  func.func @transform_0(%arg0: i32) -> (i32, i32, i32) {
    %c0_i32 = arith.constant 0 : i32
    %c0_i32_0 = arith.constant 0 : i32
    %c0_i32_1 = arith.constant 0 : i32
    return %arg0, %c0_i32, %c0_i32_0 : i32, i32, i32
  }
  func.func @transform_1(%arg0: i32) -> (i32, i32) {
    %c0_i32 = arith.constant 0 : i32
    %c0_i32_0 = arith.constant 0 : i32
    %c0_i32_1 = arith.constant 0 : i32
    return %c0_i32, %c0_i32_0 : i32, i32
  }
  func.func @transform_2(%arg0: i32) -> (i32, i32) {
    %c0_i32 = arith.constant 0 : i32
    %c0_i32_0 = arith.constant 0 : i32
    %c0_i32_1 = arith.constant 0 : i32
    return %c0_i32, %c0_i32_0 : i32, i32
  }
  func.func @transform_3(%arg0: i32) -> (i32, i32) {
    %c0_i32 = arith.constant 0 : i32
    %c0_i32_0 = arith.constant 0 : i32
    %c0_i32_1 = arith.constant 0 : i32
    return %c0_i32, %c0_i32_0 : i32, i32
  }
  func.func @transform_4(%arg0: i32) -> (i32, i32) {
    %c0_i32 = arith.constant 0 : i32
    %c0_i32_0 = arith.constant 0 : i32
    %c0_i32_1 = arith.constant 0 : i32
    return %c0_i32, %c0_i32_0 : i32, i32
  }
  func.func @transform_5(%arg0: i32) -> (i32, i32) {
    %c0_i32 = arith.constant 0 : i32
    %c0_i32_0 = arith.constant 0 : i32
    %c0_i32_1 = arith.constant 0 : i32
    return %c0_i32, %c0_i32_0 : i32, i32
  }
  func.func @transform_6(%arg0: i32) -> (i32, i32) {
    %c0_i32 = arith.constant 0 : i32
    %c0_i32_0 = arith.constant 0 : i32
    %c0_i32_1 = arith.constant 0 : i32
    return %c0_i32, %c0_i32_0 : i32, i32
  }
  func.func @transform_7(%arg0: i32) -> (i32, i32) {
    %c0_i32 = arith.constant 0 : i32
    %c0_i32_0 = arith.constant 0 : i32
    %c0_i32_1 = arith.constant 0 : i32
    return %c0_i32, %c0_i32_0 : i32, i32
  }
  func.func @transform_8(%arg0: i32) -> (i32, i32, i32) {
    %c0_i32 = arith.constant 0 : i32
    %c0_i32_0 = arith.constant 0 : i32
    %c0_i32_1 = arith.constant 0 : i32
    return %arg0, %c0_i32, %c0_i32_0 : i32, i32, i32
  }
}

</mosaic_0001>

<bundles_post_ra>
// kernel: tpu_custom_call.1
= control target key start
LH: loop header
LB: loop body
LE: loop exit
PB: predicated region body
PF: predicated region fallthrough
CT: control target
= control target key end

     0   :  { %13 = vsyncpa [#allocation3], 0  ;;  %s2257_s0 = inlined_call_operand.hbm [shape: f32[2,4,256], index: 0, kind: input, shape index: {}]   ;;  %s2258_s1 = inlined_call_operand.hbm [shape: f32[9,256], index: 1, kind: input, shape index: {}]   ;;  %s2259_s2 = inlined_call_operand.vmem [shape: f32[4,36], index: 2, kind: input, shape index: {}]   ;;  %s2260_s3 = inlined_call_operand.vmem [shape: f32[4,72], index: 3, kind: input, shape index: {}]   ;;  %s2261_s4 = inlined_call_operand.vmem [shape: f32[4,108], index: 4, kind: input, shape index: {}]   ;;  %s2262_s5 = inlined_call_operand.vmem [shape: f32[4,1], index: 5, kind: input, shape index: {}]   ;;  %s2263_s6 = inlined_call_operand.vmem [shape: f32[4,1], index: 6, kind: input, shape index: {}]   ;;  %s2264_s7 = inlined_call_operand.vmem [shape: f32[4,1], index: 7, kind: input, shape index: {}]   ;;  %s2265_s8 = inlined_call_operand.hbm [shape: f32[2,16,256], index: 8, kind: output, shape index: {}]  }
   0x1   :  { %15 = vsyncpa [#allocation3 + $0x1], 0 }
   0x2   :  { %16 = vsyncpa [#allocation6], 0 }
   0x3   :  { %17 = vsyncpa [#allocation4], 0 }
   0x4   :  { %19 = vsyncpa [#allocation4 + $0x1], 0  ;;  %s1632_s27 = smov 0   ;;  %s1634_s28 = smov 0  }
   0x5   :  { %s1636_s29 = smov 0   ;;  %s1638_s30 = smov 0  }
   0x6 LB: > { %s1653_s9 = sadd.s32 4294967295, %s1568_s30   ;;  %s1287_s10 = sadd.s32 4294967294, %s1568_s30   ;;  %s1568_s30 = sphi %s1638_s30, %s2285_s30   ;;  %s1564_s29 = sphi %s1636_s29, %s2288_s29   ;;  %s1560_s28 = sphi %s1634_s28, %s2287_s28   ;;  %s1556_s27 = sphi %s1632_s27, %s2286_s27  }
   0x7   : > { %p45_p0 = scmp.ne.s32.totalorder %s1560_s28, %s1556_s27  ;;  %p2266_p1 = scmp.eq.s32.totalorder %s1653_s9, 0 }
   0x8   : > { %p222_p3 = scmp.eq.s32.totalorder %s1287_s10, 1  ;;  %p1288_p5 = scmp.ge.s32.totalorder %s1568_s30, 1 }
   0x9   : > { %p1662_p4 = por %p2266_p1, %p45_p0  ;;  %p229_p7 = scmp.lt.s32.totalorder %s1568_s30, 3 }
   0xa   : > { %p1667_p6 = por %p222_p3, %p45_p0  ;;  %s1570_s14 = smov [#allocation5]  }
   0xb   : > { %s2271_s11 = scalar_select %p1662_p4, 1, 0 }
   0xc   : > { %s2272_s12 = scalar_select %p1667_p6, 1, 0 }
   0xd   : > { %p1672_p8 = pnand %p1288_p5, %p229_p7  ;;  %s241_s15 = sshll.u32 %s1570_s14, 4  ;;  %s1676_s15 = int_to_ptr.vmem [resolvable:$true] %s241_s15 }
   0xe   : > { %s1688_s17 = sadd.s32 1, %s1568_s30   ;;  %s32_s18 = sadd.s32 1, %s1564_s29 }
   0xf   : > { %s2273_s13 = scalar_select %p1672_p8, 1, 0 }
  0x10   : > { %p1374_p9 = pneg %p1672_p8  ;;  %2275 = sst [smem:[#allocation11_spill]] %s1688_s17 }
  0x11   : > { %s29_s19 = ssub.s32 %s1568_s30, %s1688_s17  ;;  %s1440_s22 = scalar_lea.hbm %s2258_s1, 512 }
  0x12   : > { %p1683_p11 = pnand %p1374_p9, %p2266_p1  ;;  %p1441_p12 = scmp.ne.s32.totalorder %s2258_s1, %s1440_s22 }
  0x13   : > { %p1447_p5 = scmp.lt.u32.totalorder %s1440_s22, %s2258_s1 }
  0x14   : > { %p1442_p13 = pneg %p1683_p11 }
  0x16   : > { %p1443_p0 = pnand %p1442_p13, %p1441_p12 }
  0x18   : > { %p1444_p3 = pneg %p1443_p0 }
  0x1a   : > { %p1449_p7 = pnand %p1447_p5, %p1444_p3 }
  0x1c   : > { %1452 = shalt.err (!%p1449_p7)
}
  0x1d   : > { %s1453_s10 = scalar_lea.vmem %s1676_s15, 512  ;;  %p1461_p2 = scmp.lt.s32.totalorder %s1676_s15, %s1676_s15 }
  0x1e   : > { %p1454_p9 = scmp.ne.s32.totalorder %s1676_s15, %s1453_s10  ;;  %p1462_p6 = scmp.lt.s32.totalorder %s1453_s10, %s1453_s10 }
  0x20   : > { %p1456_p10 = pnand %p1454_p9, %p1442_p13  ;;  %p1463_p4 = por %p1462_p6, %p1461_p2 }
  0x22   : > { %p1457_p1 = pneg %p1456_p10 }
  0x24   : > { %p1464_p8 = pnand %p1463_p4, %p1457_p1 }
  0x26   : > { %1467 = shalt.err (!%p1464_p8)
}
  0x27   : > { %s1571_s14 = smov 256   ;;  %s1572_s20 = smov 16  }
  0x28   : > { %1377 = dma.hbm_to_vmem [thread:$0]  (!%p1683_p11), %s2258_s1, 512, %s1676_s15, [#allocation6], %s1571_s14, %s1571_s14, %s1572_s20  }
  0x29   : > { %p30_p2 = scmp.eq.s32.totalorder %s29_s19, 0  ;;  %p39_p1 = scmp.ne.s32.totalorder %s1564_s29, %s1560_s28 }
  0x2a   : > { %p40_p4 = scmp.eq.s32.totalorder %s1568_s30, 0  ;;  %p1387_p6 = scmp.lt.s32.totalorder %s1568_s30, 2 }
  0x2b   : > { %s1719_s23 = scalar_select %p30_p2, %s1564_s29, %s32_s18  }
  0x2c   : > { %p41_p8 = por %p40_p4, %p39_p1  ;;  %p2276_p10 = scmp.eq.s32.totalorder %s1653_s9, 1 }
  0x2d   : > { %s273_s25 = sand.u32 1, %s1564_s29   ;;  %s1310_s26 = sshll.u32 %s1568_s30, 7 }
  0x2e   : > { %p1723_p12 = por %p2276_p10, %p39_p1  ;;  %s1291_s10 = sshll.u32 %s273_s25, 3 }
  0x2f   : > { %s1732_s21 = scalar_lea.hbm %s2257_s0, %s1310_s26  ;;  %s277_s15 = scalar_lea.vmem [#allocation2], %s1291_s10 }
  0x30   : > { %s285_s18 = sshll.u32 %s277_s15, 4  ;;  %p1734_p11 = pnand %p1387_p6, %p41_p8  ;;  %s1738_s18 = int_to_ptr.vmem [resolvable:$true] %s285_s18 }
  0x31   : > { %s274_s14 = scalar_lea.sflag [#allocation3], %s273_s25  ;;  %s1468_s20 = scalar_lea.hbm %s1732_s21, 128 }
  0x32   : > { %p1469_p13 = scmp.ne.s32.totalorder %s1732_s21, %s1468_s20  ;;  %p1470_p0 = pneg %p1734_p11 }
  0x33   : > { %s1473_s26 = scalar_lea.hbm %s2257_s0, 256  ;;  %p1474_p7 = scmp.lt.u32.totalorder %s1732_s21, %s2257_s0 }
  0x34   : > { %p1471_p3 = pnand %p1470_p0, %p1469_p13  ;;  %p1475_p9 = scmp.lt.u32.totalorder %s1473_s26, %s1468_s20 }
  0x35   : > { %p1477_p1 = scmp.lt.u32.totalorder %s1468_s20, %s1732_s21 }
  0x36   : > { %p1472_p5 = pneg %p1471_p3  ;;  %p1476_p2 = por %p1475_p9, %p1474_p7 }
  0x38   : > { %p1478_p4 = por %p1477_p1, %p1476_p2 }
  0x3a   : > { %p1479_p6 = pnand %p1478_p4, %p1472_p5 }
  0x3c   : > { %1482 = shalt.err (!%p1479_p6)
}
  0x3d   : > { %s1483_s25 = scalar_lea.vmem %s1738_s18, 128  ;;  %s1573_s15 = smov [#allocation2]  }
  0x3e   : > { %p1484_p8 = scmp.ne.s32.totalorder %s1738_s18, %s1483_s25  ;;  %s1488_s17 = sshll.u32 %s1573_s15, 4  ;;  %s1489_s17 = int_to_ptr.vmem [resolvable:$false] %s1488_s17 }
  0x3f   : > { %s1490_s22 = scalar_lea.vmem %s1489_s17, 256  ;;  %p1491_p3 = scmp.lt.s32.totalorder %s1738_s18, %s1489_s17 }
  0x40   : > { %p1486_p10 = pnand %p1484_p8, %p1470_p0  ;;  %p1492_p7 = scmp.lt.s32.totalorder %s1490_s22, %s1483_s25 }
  0x42   : > { %p1487_p13 = pneg %p1486_p10  ;;  %p1493_p9 = por %p1492_p7, %p1491_p3 }
  0x44   : > { %p1494_p2 = pnand %p1493_p9, %p1487_p13 }
  0x46   : > { %1497 = shalt.err (!%p1494_p2)
}
  0x47   : > { %1381 = dma.hbm_to_vmem [thread:$0]  (!%p1734_p11), %s1732_s21, 128, %s1738_s18, %s274_s14  }
  0x48   : > { %p2279_p5 = scmp.ne.s32.totalorder %s2273_s13, 0 }
  0x49   : > { %s1768_s20 = sand.u32 (!%p2279_p5), 1, %s1560_s28   ;;  %p2280_p0 = scmp.ne.s32.totalorder (!%p2279_p5), %s2271_s11, 0 }
  0x4a   : > { %294 = sbr.rel (%p2279_p5) target bundleno = 1242 (0x4da), region = 52  ;;  %s1295_s26 = sshll.u32 (!%p2279_p5), %s1768_s20, 3 }
  0x4b   : > { %s297_s10 = scalar_lea.sflag (!%p2279_p5), [#allocation3], %s1768_s20  ;;  %s300_s16 = scalar_lea.vmem (!%p2279_p5), [#allocation2], %s1295_s26 }
  0x51   : > { %1543 = dma.done.wait (%p2280_p0), %s297_s10, 128  }
  0x52   : > { %1545 = vsyncadd (%p2280_p0), %s297_s10, 4294967168  ;;  %p2281_p1 = scmp.eq.s32.totalorder %s1653_s9, 0 }
  0x54   : > { %1547 = dma.done.wait (%p2281_p1), [#allocation6], 512   ;;  %p2282_p11 = pmov %p2281_p1 }
  0x55   : > { %s1297_s13 = sshll.u32 %s1768_s20, 5  ;;  %v337_v0 = vld [vmem:[%s300_s16] sm:$0xff]  ;;  %s1574_s11 = smov 1   ;;  %v1580_v4 = vmov 0.0   ;;  %v1582_v5 = vmov 0   ;;  %v374_v7 = vlaneseq  ;;  %vm434_vm0 = vcmask 7168  }
  0x56   : > { %1549 = vsyncadd (%p2282_p11), [#allocation6], 4294966784  ;;  %s1781_s21 = scalar_lea.vmem [#allocation7], %s1297_s13  ;;  %v339_v1 = vcombine.high %v337_v0, %v337_v0  ;;  %s1575_s18 = smov 16   ;;  %667 = vmatprep.mubr.f32.mxu1 %v1580_v4  ;;  %1173 = vmatprep.mubr.f32.mxu0 %v1580_v4  ;;  %v587_v6 = vld [vmem:[%s2262_s5] sm:$0xf] }
  0x57   : > { %341 = vst [vmem:[%s1781_s21] sm:$0xf] %v337_v0  ;;  %s1576_s19 = smov 17   ;;  %s1577_s14 = smov 15   ;;  %1437 = vset.pattern.permute.xlu0 %v1582_v5  ;;  %1438 = vset.pattern.permute.xlu1 %v1582_v5  ;;  %v375_v8 = vshrl.u32 %v374_v7, 7  ;;  %vm390_vm1 = vcmask 130048   ;;  %vm412_vm2 = vcmask 121856  }
  0x58   : > { %342 = vst [vmem:[%s1781_s21 + $0x8] sm:$0xf] %v339_v1  ;;  %s1578_s25 = smov 112   ;;  %s1579_s15 = smov 127   ;;  %vm368_vm3 = vcmask 138240   ;;  %vm469_vm4 = vcmask 1039360  }
  0x59   : > { %s1581_s17 = smov 113   ;;  %s1583_s22 = smov 111   ;;  %v1828_v11 = vsub.s32 0, %v375_v8  ;;  %v349_v12 = vld [vmem:[#allocation5 + $0x3] ss:$8 sm:$0x3] }
  0x5a   : > { %v1830_v14 = vsub.s32 1, %v375_v8  ;;  %v345_v16 = vld [vmem:[#allocation5 + $0x1] ss:$8 sm:$0x3]  ;;  %vm513_vm5 = vcmask 916480   ;;  %vm577_vm6 = vcmask 1043456  }
  0x5b   : > { %v347_v17 = vld [vmem:[#allocation5 + $0x2] ss:$8 sm:$0x3]  ;;  %v1833_v18 = vrot.slane %v349_v12, %v1828_v11  ;;  %v1837_v20 = vrot.slane %v345_v16, %v1828_v11  ;;  %v343_v21 = vld [vmem:[#allocation5] ss:$8 sm:$0x3] }
  0x5c   : > { %v1840_v22 = vrot.slane %v349_v12, %v1830_v14  ;;  %v1845_v27 = vrot.slane %v347_v17, %v1828_v11  ;;  %v1849_v29 = vrot.slane %v347_v17, %v1830_v14  ;;  %v1852_v30 = vrot.slane %v345_v16, %v1830_v14  ;;  %v353_v43 = vld [vmem:[#allocation5 + $0x5] ss:$8 sm:$0x3]  ;;  %v357_v46 = vld [vmem:[#allocation5 + $0x7] ss:$8 sm:$0x3] }
  0x5d   : > { %v1856_v32 = vrot.slane %v343_v21, %v1828_v11  ;;  %v1862_v36 = vrot.slane %v343_v21, %v1830_v14  ;;  %v1873_v53 = vrot.slane %v353_v43, %v1830_v14  ;;  %v1876_v56 = vrot.slane %v357_v46, %v1830_v14  ;;  %v351_v59 = vld [vmem:[#allocation5 + $0x4] ss:$8 sm:$0x3]  ;;  %v355_v0 = vld [vmem:[#allocation5 + $0x6] ss:$8 sm:$0x3] }
  0x5e   : > { %v1786_v2 = vld [vmem:[%s1781_s21] sm:$0xf]  ;;  %v1881_v60 = vrot.slane %v357_v46, %v1828_v11  ;;  %v1884_v61 = vrot.slane %v353_v43, %v1828_v11  ;;  %v1892_v12 = vrot.slane %v351_v59, %v1830_v14  ;;  %vm491_vm7 = vcmask 924672   ;;  %s1191_s16 = scalar_lea.sflag [#allocation4], %s1768_s20 }
  0x5f   : > { %430 = vrot.lane.b32.xlu1 %v1786_v2, %s1574_s11  ;;  %386 = vrot.lane.b32.xlu0 %v1786_v2, %s1575_s18  ;;  %v1793_v3 = vld [vmem:[%s1781_s21 + $0x8] sm:$0xf]  ;;  %v1900_v17 = vrot.slane %v355_v0, %v1828_v11  ;;  %vm535_vm8 = vcmask 908288   ;;  %vm593_vm9 = vcmask 293888   ;;  %vm777_vm10 = vcmask 588800  }
  0x60   : > { %vm1584_vm11 = vmmov 1   ;;  %vm1099_vm13 = vcmask 883712  }
  0x61   : > { %vm1361_vm12 = vmpackc.low %vm577_vm6, %vm1584_vm11 }
  0x63   : > { %364 = vrot.lane.b32.xlu0 %v1786_v2, %s1576_s19  ;;  %432 = vrot.lane.b32.xlu1 %v1793_v3, %s1574_s11 }
  0x67   : > { %408 = vrot.lane.b32.xlu0 %v1786_v2, %s1577_s14  ;;  %366 = vrot.lane.b32.xlu1 %v1793_v3, %s1576_s19 }
  0x6b   : > { %410 = vrot.lane.b32.xlu1 %v1793_v3, %s1577_s14  ;;  %388 = vrot.lane.b32.xlu0 %v1793_v3, %s1575_s18 }
  0x6f   : > { %511 = vrot.lane.b32.xlu1 %v1793_v3, %s1578_s25  ;;  %467 = vrot.lane.b32.xlu0 %v1793_v3, %s1579_s15 }
  0x73   : > { %509 = vrot.lane.b32.xlu1 %v1786_v2, %s1578_s25  ;;  %465 = vrot.lane.b32.xlu0 %v1786_v2, %s1579_s15 }
  0x77   : > { %487 = vrot.lane.b32.xlu1 %v1786_v2, %s1581_s17  ;;  %489 = vrot.lane.b32.xlu0 %v1793_v3, %s1581_s17 }
  0x7b   : > { %531 = vrot.lane.b32.xlu1 %v1786_v2, %s1583_s22  ;;  %533 = vrot.lane.b32.xlu0 %v1793_v3, %s1583_s22 }
  0x7f   : > { %590 = vperm.xlu0 %1437, %v587_v6  }
  0xd1   : > { %v431_v9 = vpop.permute.xlu1 %430  ;;  %v387_v10 = vpop.permute.xlu0 %386 }
  0xd2   : > { %v438_v19 = vsel %vm434_vm0, 0.0, %v431_v9  ;;  %v394_v25 = vsel %vm390_vm1, 0.0, %v387_v10 }
  0xd3   : > { %v450_v31 = vmul.f32 %v1833_v18, %v438_v19  ;;  %v406_v33 = vmul.f32 %v1837_v20, %v394_v25  ;;  %v359_v25 = vld [vmem:[#allocation5 + $0x10] ss:$8 sm:$0x3] }
  0xd5   : > { %v365_v13 = vpop.permute.xlu0 %364  ;;  %v433_v15 = vpop.permute.xlu1 %432  ;;  %v561_v47 = vrot.slane %v450_v31, 4  ;;  %v555_v55 = vrot.slane %v406_v33, 4 }
  0xd6   : > { %v435_v26 = vsel %vm434_vm0, %v431_v9, %v433_v15  ;;  %v372_v34 = vsel %vm368_vm3, 0.0, %v365_v13 }
  0xd7   : > { %v451_v35 = vmul.f32 %v1840_v22, %v435_v26  ;;  %v384_v48 = vmul.f32 %v1856_v32, %v372_v34  ;;  %v464_v34 = vmul.f32 %v1892_v12, %v1793_v3 }
  0xd9   : > { %v409_v23 = vpop.permute.xlu0 %408  ;;  %v367_v24 = vpop.permute.xlu1 %366  ;;  %v562_v49 = vrot.slane %v451_v35, 4  ;;  %v578_v6 = vsel %vm577_vm6, %v384_v48, %v555_v55 }
  0xda   : > { %v416_v28 = vsel %vm412_vm2, 0.0, %v409_v23  ;;  %v369_v40 = vsel %vm368_vm3, %v365_v13, %v367_v24  ;;  %v1895_v13 = vrot.slane %v351_v59, %v1828_v11  ;;  %v1906_v24 = vrot.slane %v355_v0, %v1830_v14 }
  0xdb   : > { %v428_v39 = vmul.f32 %v1845_v27, %v416_v28  ;;  %v385_v50 = vmul.f32 %v1862_v36, %v369_v40 }
  0xdc   : > { %v463_v35 = vmul.f32 %v1895_v13, %v1786_v2 }
  0xdd   : > { %v411_v37 = vpop.permute.xlu1 %410  ;;  %v389_v38 = vpop.permute.xlu0 %388  ;;  %v580_v58 = vsel %vm577_vm6, %v428_v39, %v561_v47  ;;  %v1915_v39 = vrot.slane %v359_v25, %v1830_v14 }
  0xde   : > { %v413_v41 = vsel %vm412_vm2, %v409_v23, %v411_v37  ;;  %v391_v42 = vsel %vm390_vm1, %v387_v10, %v389_v38  ;;  %v1314_v10 = vpack.c.bf16 %v580_v58, %v578_v6 }
  0xdf   : > { %v429_v44 = vmul.f32 %v1849_v29, %v413_v41  ;;  %v407_v45 = vmul.f32 %v1852_v30, %v391_v42 }
  0xe1   : > { %v556_v51 = vrot.slane %v407_v45, 4  ;;  %v512_v52 = vpop.permute.xlu1 %511  ;;  %v468_v54 = vpop.permute.xlu0 %467  ;;  %v581_v63 = vsel %vm577_vm6, %v429_v44, %v562_v49  ;;  %v1920_v44 = vrot.slane %v359_v25, %v1828_v11 }
  0xe2   : > { %v473_v57 = vsel %vm469_vm4, %v468_v54, 0.0  ;;  %v517_v1 = vsel %vm513_vm5, %v512_v52, 0.0 }
  0xe3   : > { %v579_v62 = vsel %vm577_vm6, %v385_v50, %v556_v51  ;;  %v486_v7 = vmul.f32 %v1873_v53, %v473_v57  ;;  %v530_v19 = vmul.f32 %v1876_v56, %v517_v1 }
  0xe4   : > { %v1312_v5 = vpack.c.bf16 %v581_v63, %v579_v62 }
  0xe5   : > { %v510_v8 = vpop.permute.xlu1 %509  ;;  %v466_v9 = vpop.permute.xlu0 %465  ;;  %v568_v26 = vrot.slane %v486_v7, 4  ;;  %v574_v40 = vrot.slane %v530_v19, 4  ;;  %v771_v7 = vld [vmem:[%s2263_s6] sm:$0xf] }
  0xe6   : > { %v514_v15 = vsel %vm513_vm5, %v510_v8, %v512_v52  ;;  %v470_v16 = vsel %vm469_vm4, %v466_v9, %v468_v54  ;;  %1313 = vmatprep.subr.bf16.mxu1 %v1312_v5  ;;  %v586_v54 = vld [vmem:[%s2259_s2] sm:$0xf] }
  0xe7   : > { %v529_v21 = vmul.f32 %v1881_v60, %v514_v15  ;;  %v485_v23 = vmul.f32 %v1884_v61, %v470_v16  ;;  %1315 = vmatpush1.bf16.msra.mxu1 %v1314_v10  ;;  %v583_v2 = vsel %vm577_vm6, %v464_v34, %v568_v26 }
  0xe9   : > { %v567_v28 = vrot.slane %v485_v23, 4  ;;  %v488_v31 = vpop.permute.xlu1 %487  ;;  %v490_v33 = vpop.permute.xlu0 %489  ;;  %v573_v41 = vrot.slane %v529_v21, 4 }
  0xea   : > { %v492_v37 = vsel %vm491_vm7, %v488_v31, %v490_v33  ;;  %v495_v38 = vsel %vm491_vm7, %v490_v33, 0.0 }
  0xeb   : > { %v507_v42 = vmul.f32 %v1900_v17, %v492_v37  ;;  %v508_v43 = vmul.f32 %v1906_v24, %v495_v38  ;;  %v582_v47 = vsel %vm577_vm6, %v463_v35, %v567_v28 }
  0xed   : > { %v532_v3 = vpop.permute.xlu1 %531  ;;  %v534_v45 = vpop.permute.xlu0 %533  ;;  %v585_v46 = vsel %vm577_vm6, %v508_v43, %v574_v40  ;;  %v584_v14 = vsel %vm577_vm6, %v507_v42, %v573_v41 }
  0xee   : > { %v536_v48 = vsel %vm535_vm8, %v532_v3, %v534_v45  ;;  %v539_v49 = vsel %vm535_vm8, %v534_v45, 0.0  ;;  %v1316_v50 = vpack.c.bf16 %v585_v46, %v583_v2  ;;  %v1318_v51 = vpack.c.bf16 %v584_v14, %v582_v47 }
  0xef   : > { %v552_v52 = vmul.f32 %v1915_v39, %v539_v49  ;;  %v551_v11 = vmul.f32 %v1920_v44, %v536_v48 }
  0xf0   : > { %1317 = vmatprep.subr.bf16.mxu1 %v1316_v50 }
  0xf1   : > { %1319 = vmatpush1.bf16.msra.mxu1 %v1318_v51 }
  0xf2   : > { %1298 = vmatprep.subr.msk.mxu1 %vm577_vm6, %v552_v52 }
  0xf5   : > { %1299 = vmatpush1.msk.msra.mxu1 %vm577_vm6, %v551_v11 }
  0xf6   : > { %1300 = vmatmul.mubr.msk.f32.vlgmr.msra.gmra.mrb[0].mxu1 %vm593_vm9, %v586_v54 }
  0xf7   : > { %845 = vmatprep.mubr.f32.mxu1 %v1580_v4 }
  0xfe   : > { %v591_v55 = vpop.permute.xlu0 %590 }
 0x1c9   : > { %v669_v57 = vpop.f32.mrb[0].mxu1 }
 0x1ca   : > { %v670_v58 = vadd.f32 %v669_v57, %v591_v55  ;;  %v671_v59 = vpop.f32.mrb[1].mxu1 }
 0x1cb   : > { %v672_v62 = vadd.f32 %v671_v59, %v591_v55 }
 0x1cc   : > { %v674_v63 = vmax.f32 %v670_v58, 0.0 }
 0x1cd   : > { %v675_v0 = vmax.f32 %v672_v62, 0.0 }
 0x1ce   : > { %v678_v1 = vrot.slane %v674_v63, 4 }
 0x1cf   : > { %v679_v5 = vrot.slane %v675_v0, 4 }
 0x1d0   : > { %682 = vst [vmem:[%s1781_s21] sm:$0xf0] %v678_v1 }
 0x1d1   : > { %683 = vst [vmem:[%s1781_s21 + $0x8] sm:$0xf0] %v679_v5 }
 0x1d7   : > { %v1939_v6 = vld [vmem:[%s1781_s21] sm:$0xff] }
 0x1d8   : > { %698 = vrot.lane.b32.xlu0 %v1939_v6, %s1575_s18  ;;  %688 = vrot.lane.b32.xlu1 %v1939_v6, %s1576_s19  ;;  %v1946_v4 = vld [vmem:[%s1781_s21 + $0x8] sm:$0xff]  ;;  %v2030_v58 = vmul.f32 %v1939_v6, %v1895_v13 }
 0x1d9   : > { %v2025_v11 = vmul.f32 %v1946_v4, %v1892_v12 }
 0x1dc   : > { %708 = vrot.lane.b32.xlu0 %v1939_v6, %s1577_s14  ;;  %690 = vrot.lane.b32.xlu1 %v1946_v4, %s1576_s19 }
 0x1e0   : > { %718 = vrot.lane.b32.xlu0 %v1939_v6, %s1574_s11  ;;  %700 = vrot.lane.b32.xlu1 %v1946_v4, %s1575_s18 }
 0x1e4   : > { %732 = vrot.lane.b32.xlu0 %v1946_v4, %s1579_s15  ;;  %710 = vrot.lane.b32.xlu1 %v1946_v4, %s1577_s14 }
 0x1e8   : > { %742 = vrot.lane.b32.xlu0 %v1946_v4, %s1581_s17  ;;  %720 = vrot.lane.b32.xlu1 %v1946_v4, %s1574_s11 }
 0x1ec   : > { %740 = vrot.lane.b32.xlu0 %v1939_v6, %s1581_s17  ;;  %730 = vrot.lane.b32.xlu1 %v1939_v6, %s1579_s15 }
 0x1f0   : > { %762 = vrot.lane.b32.xlu0 %v1946_v4, %s1583_s22  ;;  %752 = vrot.lane.b32.xlu1 %v1946_v4, %s1578_s25 }
 0x1f4   : > { %774 = vperm.xlu0 %1437, %v771_v7   ;;  %750 = vrot.lane.b32.xlu1 %v1939_v6, %s1578_s25 }
 0x1f8   : > { %948 = vrot.lane.b32.xlu0 %v1939_v6, %s1579_s15  ;;  %760 = vrot.lane.b32.xlu1 %v1939_v6, %s1583_s22 }
 0x1fc   : > { %968 = vrot.lane.b32.xlu0 %v1939_v6, %s1581_s17  ;;  %884 = vrot.lane.b32.xlu1 %v1939_v6, %s1575_s18 }
 0x200   : > { %886 = vrot.lane.b32.xlu0 %v1946_v4, %s1575_s18  ;;  %864 = vrot.lane.b32.xlu1 %v1939_v6, %s1576_s19 }
 0x204   : > { %866 = vrot.lane.b32.xlu0 %v1946_v4, %s1576_s19  ;;  %904 = vrot.lane.b32.xlu1 %v1939_v6, %s1577_s14 }
 0x208   : > { %906 = vrot.lane.b32.xlu0 %v1946_v4, %s1577_s14  ;;  %924 = vrot.lane.b32.xlu1 %v1939_v6, %s1574_s11 }
 0x20c   : > { %926 = vrot.lane.b32.xlu0 %v1946_v4, %s1574_s11  ;;  %950 = vrot.lane.b32.xlu1 %v1946_v4, %s1579_s15 }
 0x210   : > { %970 = vrot.lane.b32.xlu1 %v1946_v4, %s1581_s17 }
 0x214   : > { %990 = vrot.lane.b32.xlu1 %v1946_v4, %s1578_s25 }
 0x24a   : > { %v699_v8 = vpop.permute.xlu0 %698  ;;  %v689_v9 = vpop.permute.xlu1 %688 }
 0x24b   : > { %v705_v16 = vsel %vm390_vm1, 0.0, %v699_v8  ;;  %v695_v19 = vsel %vm368_vm3, 0.0, %v689_v9 }
 0x24c   : > { %v706_v26 = vmul.f32 %v705_v16, %v1837_v20  ;;  %v696_v28 = vmul.f32 %v695_v19, %v1856_v32 }
 0x24e   : > { %v709_v10 = vpop.permute.xlu0 %708  ;;  %v691_v15 = vpop.permute.xlu1 %690  ;;  %v1322_v40 = vpack.c.bf16 %v706_v26, %v696_v28 }
 0x24f   : > { %v692_v21 = vsel %vm368_vm3, %v689_v9, %v691_v15  ;;  %v715_v3 = vsel %vm412_vm2, 0.0, %v709_v10 }
 0x250   : > { %v697_v33 = vmul.f32 %v692_v21, %v1862_v36  ;;  %v716_v50 = vmul.f32 %v715_v3, %v1845_v27 }
 0x252   : > { %v719_v23 = vpop.permute.xlu0 %718  ;;  %v701_v25 = vpop.permute.xlu1 %700 }
 0x253   : > { %v702_v31 = vsel %vm390_vm1, %v699_v8, %v701_v25  ;;  %v725_v41 = vsel %vm434_vm0, 0.0, %v719_v23 }
 0x254   : > { %v707_v34 = vmul.f32 %v702_v31, %v1852_v30  ;;  %v726_v46 = vmul.f32 %v725_v41, %v1833_v18 }
 0x256   : > { %v733_v35 = vpop.permute.xlu0 %732  ;;  %v711_v37 = vpop.permute.xlu1 %710  ;;  %v1320_v38 = vpack.c.bf16 %v707_v34, %v697_v33  ;;  %v1326_v54 = vpack.c.bf16 %v726_v46, %v716_v50  ;;  %v1093_v46 = vld [vmem:[%s2264_s7] sm:$0xf] }
 0x257   : > { %v737_v42 = vsel %vm469_vm4, %v733_v35, 0.0  ;;  %v712_v43 = vsel %vm412_vm2, %v709_v10, %v711_v37 }
 0x258   : > { %1321 = vmatprep.subr.bf16.mxu1 %v1320_v38  ;;  %v739_v14 = vmul.f32 %v737_v42, %v1873_v53  ;;  %v717_v48 = vmul.f32 %v712_v43, %v1849_v29 }
 0x259   : > { %1323 = vmatpush1.bf16.msra.mxu1 %v1322_v40 }
 0x25a   : > { %v743_v45 = vpop.permute.xlu0 %742  ;;  %v721_v2 = vpop.permute.xlu1 %720  ;;  %v1328_v62 = vpack.c.bf16 %v739_v14, %v2025_v11 }
 0x25b   : > { %v722_v47 = vsel %vm434_vm0, %v719_v23, %v721_v2  ;;  %v747_v63 = vsel %vm491_vm7, %v743_v45, 0.0 }
 0x25c   : > { %v727_v49 = vmul.f32 %v722_v47, %v1840_v22  ;;  %v749_v7 = vmul.f32 %v747_v63, %v1906_v24 }
 0x25e   : > { %v731_v51 = vpop.permute.xlu1 %730  ;;  %v1324_v52 = vpack.c.bf16 %v727_v49, %v717_v48  ;;  %v741_v55 = vpop.permute.xlu0 %740 }
 0x25f   : > { %v734_v57 = vsel %vm469_vm4, %v731_v51, %v733_v35  ;;  %v744_v9 = vsel %vm491_vm7, %v741_v55, %v743_v45  ;;  %v770_v35 = vld [vmem:[%s2260_s3] sm:$0xf] }
 0x260   : > { %v738_v59 = vmul.f32 %v734_v57, %v1884_v61  ;;  %1325 = vmatprep.subr.bf16.mxu1 %v1324_v52  ;;  %v748_v21 = vmul.f32 %v744_v9, %v1900_v17 }
 0x261   : > { %1327 = vmatpush1.bf16.msra.mxu1 %v1326_v54 }
 0x262   : > { %v1330_v0 = vpack.c.bf16 %v738_v59, %v2030_v58  ;;  %1329 = vmatprep.subr.bf16.mxu1 %v1328_v62  ;;  %v753_v1 = vpop.permute.xlu1 %752  ;;  %v763_v10 = vpop.permute.xlu0 %762 }
 0x263   : > { %v757_v5 = vsel %vm513_vm5, %v753_v1, 0.0  ;;  %v767_v23 = vsel %vm535_vm8, %v763_v10, 0.0 }
 0x264   : > { %v759_v8 = vmul.f32 %v757_v5, %v1876_v56  ;;  %v769_v31 = vmul.f32 %v767_v23, %v1915_v39 }
 0x265   : > { %1331 = vmatpush1.bf16.msra.mxu1 %v1330_v0 }
 0x266   : > { %v751_v15 = vpop.permute.xlu1 %750  ;;  %v1332_v16 = vpack.c.bf16 %v759_v8, %v749_v7 }
 0x267   : > { %v754_v19 = vsel %vm513_vm5, %v751_v15, %v753_v1 }
 0x268   : > { %v758_v25 = vmul.f32 %v754_v19, %v1881_v60  ;;  %1333 = vmatprep.subr.bf16.mxu1 %v1332_v16 }
 0x26a   : > { %v1334_v26 = vpack.c.bf16 %v758_v25, %v748_v21  ;;  %v761_v28 = vpop.permute.xlu1 %760 }
 0x26b   : > { %v764_v33 = vsel %vm535_vm8, %v761_v28, %v763_v10 }
 0x26c   : > { %1335 = vmatpush1.bf16.msra.mxu1 %v1334_v26  ;;  %v768_v34 = vmul.f32 %v764_v33, %v1920_v44 }
 0x26d   : > { %797 = vmatprep.subr.mxu1 %v769_v31 }
 0x26e   : > { %v885_v47 = vpop.permute.xlu1 %884 }
 0x26f   : > { %v898_v62 = vsel %vm390_vm1, 0.0, %v885_v47 }
 0x270   : > { %798 = vmatpush1.msra.mxu1 %v768_v34  ;;  %v900_v5 = vmul.f32 %v898_v62, %v1837_v20 }
 0x271   : > { %1301 = vmatmul.mubr.msk.f32.vlgmr.msra.gmra.mrb[2].mxu1 %vm777_vm10, %v770_v35 }
 0x272   : > { %v865_v14 = vpop.permute.xlu1 %864  ;;  %v1032_v19 = vrot.slane %v900_v5, 4 }
 0x273   : > { %v775_v37 = vpop.permute.xlu0 %774  ;;  %v878_v21 = vsel %vm368_vm3, 0.0, %v865_v14 }
 0x274   : > { %v880_v35 = vmul.f32 %v878_v21, %v1856_v32 }
 0x276   : > { %v905_v49 = vpop.permute.xlu1 %904 }
 0x277   : > { %v949_v48 = vpop.permute.xlu0 %948 }
 0x27b   : > { %v2099_v50 = vpop.permute.xlu0 %968 }
 0x27f   : > { %v887_v51 = vpop.permute.xlu0 %886 }
 0x280   : > { %v892_v63 = vsel %vm390_vm1, %v885_v47, %v887_v51 }
 0x281   : > { %v901_v8 = vmul.f32 %v892_v63, %v1852_v30 }
 0x283   : > { %v867_v54 = vpop.permute.xlu0 %866  ;;  %v1033_v26 = vrot.slane %v901_v8, 4 }
 0x284   : > { %v872_v10 = vsel %vm368_vm3, %v865_v14, %v867_v54 }
 0x285   : > { %v881_v33 = vmul.f32 %v872_v10, %v1862_v36 }
 0x344   : > { %v847_v38 = vpop.f32.mrb[2].mxu1 }
 0x345   : > { %v848_v40 = vadd.f32 %v847_v38, %v775_v37  ;;  %v849_v41 = vpop.f32.mrb[3].mxu1 }
 0x346   : > { %v850_v42 = vadd.f32 %v849_v41, %v775_v37  ;;  %v918_v37 = vsel %vm412_vm2, 0.0, %v905_v49 }
 0x347   : > { %v852_v43 = vmax.f32 %v848_v40, 0.0 }
 0x348   : > { %v853_v3 = vmax.f32 %v850_v42, 0.0 }
 0x349   : > { %854 = vst [vmem:[%s1781_s21 + $0x10] sm:$0xf] %v852_v43 }
 0x34a   : > { %855 = vst [vmem:[%s1781_s21 + $0x18] sm:$0xf] %v853_v3 }
 0x350   : > { %v2053_v45 = vld [vmem:[%s1781_s21 + $0x10] sm:$0xf] }
 0x351   : > { %952 = vrot.lane.b32.xlu0 %v2053_v45, %s1579_s15  ;;  %868 = vrot.lane.b32.xlu1 %v2053_v45, %s1576_s19  ;;  %v2060_v2 = vld [vmem:[%s1781_s21 + $0x18] sm:$0xf] }
 0x355   : > { %870 = vrot.lane.b32.xlu0 %v2060_v2, %s1576_s19  ;;  %888 = vrot.lane.b32.xlu1 %v2053_v45, %s1575_s18 }
 0x359   : > { %890 = vrot.lane.b32.xlu0 %v2060_v2, %s1575_s18  ;;  %928 = vrot.lane.b32.xlu1 %v2053_v45, %s1574_s11 }
 0x35d   : > { %930 = vrot.lane.b32.xlu0 %v2060_v2, %s1574_s11  ;;  %908 = vrot.lane.b32.xlu1 %v2053_v45, %s1577_s14 }
 0x361   : > { %910 = vrot.lane.b32.xlu0 %v2060_v2, %s1577_s14  ;;  %988 = vrot.lane.b32.xlu1 %v1939_v6, %s1578_s25 }
 0x365   : > { %992 = vrot.lane.b32.xlu0 %v2053_v45, %s1578_s25  ;;  %954 = vrot.lane.b32.xlu1 %v2060_v2, %s1579_s15  ;;  %s1311_s15 = sshll.u32 %s1653_s9, 9  ;;  %s1585_s9 = smov [#allocation7]  }
 0x366   : > { %s2208_s10 = scalar_lea.hbm %s2265_s8, %s1311_s15  ;;  %s1502_s11 = sshll.u32 %s1585_s9, 4  ;;  %s1503_s11 = int_to_ptr.vmem [resolvable:$false] %s1502_s11 }
 0x367   : > { %s1504_s19 = scalar_lea.vmem %s1503_s11, 1024 }
 0x369   : > { %972 = vrot.lane.b32.xlu0 %v2053_v45, %s1581_s17  ;;  %974 = vrot.lane.b32.xlu1 %v2060_v2, %s1581_s17  ;;  %s1204_s17 = sshll.u32 %s1781_s21, 4  ;;  %s2210_s17 = int_to_ptr.vmem [resolvable:$true] %s1204_s17 }
 0x36a   : > { %s1498_s13 = scalar_lea.vmem %s2210_s17, 512  ;;  %p1505_p10 = scmp.lt.s32.totalorder %s2210_s17, %s1503_s11 }
 0x36b   : > { %p1499_p4 = scmp.ne.s32.totalorder %s2210_s17, %s1498_s13  ;;  %p1506_p13 = scmp.lt.s32.totalorder %s1504_s19, %s1498_s13 }
 0x36d   : > { %994 = vrot.lane.b32.xlu0 %v2060_v2, %s1578_s25  ;;  %1010 = vrot.lane.b32.xlu1 %v1946_v4, %s1583_s22  ;;  %v925_v4 = vpop.permute.xlu1 %924  ;;  %p1500_p6 = pnand %p1499_p4, %p1723_p12  ;;  %p1507_p3 = por %p1506_p13, %p1505_p10 }
 0x36e   : > { %v938_v38 = vsel %vm434_vm0, 0.0, %v925_v4 }
 0x36f   : > { %v940_v62 = vmul.f32 %v938_v38, %v1833_v18  ;;  %p1501_p8 = pneg %p1500_p6 }
 0x371   : > { %1014 = vrot.lane.b32.xlu0 %v2060_v2, %s1583_s22  ;;  %1008 = vrot.lane.b32.xlu1 %v1939_v6, %s1583_s22  ;;  %v951_v52 = vpop.permute.xlu1 %950  ;;  %v907_v6 = vpop.permute.xlu0 %906  ;;  %p1508_p7 = pnand %p1507_p3, %p1501_p8 }
 0x372   : > { %v912_v43 = vsel %vm412_vm2, %v905_v49, %v907_v6  ;;  %v962_v51 = vsel %vm469_vm4, %v951_v52, 0.0  ;;  %v956_v49 = vsel %vm469_vm4, %v949_v48, %v951_v52 }
 0x373   : > { %v921_v6 = vmul.f32 %v912_v43, %v1849_v29 }
 0x375   : > { %1012 = vrot.lane.b32.xlu0 %v2053_v45, %s1583_s22  ;;  %1096 = vperm.xlu1 %1438, %v1093_v46   ;;  %v2101_v55 = vpop.permute.xlu1 %970  ;;  %v927_v59 = vpop.permute.xlu0 %926 }
 0x376   : > { %v932_v54 = vsel %vm434_vm0, %v925_v4, %v927_v59  ;;  %v965_v4 = vmul.f32 %v962_v51, %v1873_v53 }
 0x377   : > { %v941_v59 = vmul.f32 %v932_v54, %v1840_v22 }
 0x379   : > { %v2103_v57 = vpop.permute.xlu1 %990 }
 0x3c3   : > { %v2107_v0 = vpop.permute.xlu0 %952  ;;  %v869_v1 = vpop.permute.xlu1 %868 }
 0x3c4   : > { %v879_v7 = vsel %vm368_vm3, 0.0, %v869_v1 }
 0x3c5   : > { %v882_v9 = vmul.f32 %v879_v7, %v1856_v32  ;;  %v920_v32 = vmul.f32 %v918_v37, %v1845_v27 }
 0x3c7   : > { %v871_v15 = vpop.permute.xlu0 %870  ;;  %v889_v16 = vpop.permute.xlu1 %888  ;;  %v1084_v34 = vsel %vm577_vm6, %v882_v9, %v1032_v19 }
 0x3c8   : > { %v873_v23 = vsel %vm368_vm3, %v869_v1, %v871_v15  ;;  %v899_v25 = vsel %vm390_vm1, 0.0, %v889_v16  ;;  %v1338_v14 = vpack.c.bf16 %v1084_v34, %v880_v35  ;;  %v1047_v34 = vrot.slane %v941_v59, 4 }
 0x3c9   : > { %v883_v28 = vmul.f32 %v873_v23, %v1862_v36  ;;  %v902_v31 = vmul.f32 %v899_v25, %v1837_v20  ;;  %v946_v35 = vmul.f32 %v2053_v45, %v1895_v13  ;;  %v982_v13 = vsel %vm491_vm7, %v2101_v55, 0.0 }
 0x3cb   : > { %v891_v40 = vpop.permute.xlu0 %890  ;;  %v929_v41 = vpop.permute.xlu1 %928  ;;  %v1085_v42 = vsel %vm577_vm6, %v883_v28, %v1033_v26  ;;  %v1034_v3 = vrot.slane %v902_v31, 4  ;;  %v1046_v28 = vrot.slane %v940_v62, 4 }
 0x3cc   : > { %v893_v46 = vsel %vm390_vm1, %v889_v16, %v891_v40  ;;  %v1336_v20 = vpack.c.bf16 %v1085_v42, %v881_v33  ;;  %v939_v47 = vsel %vm434_vm0, 0.0, %v929_v41  ;;  %v964_v16 = vmul.f32 %v956_v49, %v1884_v61 }
 0x3cd   : > { %v903_v36 = vmul.f32 %v893_v46, %v1852_v30  ;;  %v942_v5 = vmul.f32 %v939_v47, %v1833_v18  ;;  %v1035_v9 = vsel %vm577_vm6, %v1032_v19, %v1034_v3  ;;  %v947_v19 = vmul.f32 %v2060_v2, %v1892_v12 }
 0x3ce   : > { %1337 = vmatprep.subr.bf16.mxu0 %v1336_v20  ;;  %v1342_v25 = vpack.c.bf16 %v920_v32, %v1035_v9  ;;  %v1060_v37 = vrot.slane %v964_v16, 4 }
 0x3cf   : > { %v1036_v63 = vrot.slane %v903_v36, 4  ;;  %v931_v1 = vpop.permute.xlu0 %930  ;;  %1339 = vmatpush1.bf16.msra.mxu0 %v1338_v14  ;;  %v909_v30 = vpop.permute.xlu1 %908  ;;  %v1048_v31 = vrot.slane %v942_v5, 4 }
 0x3d0   : > { %v933_v7 = vsel %vm434_vm0, %v929_v41, %v931_v1  ;;  %v919_v8 = vsel %vm412_vm2, 0.0, %v909_v30  ;;  %v1088_v47 = vsel %vm577_vm6, %v946_v35, %v1060_v37 }
 0x3d1   : > { %v943_v48 = vmul.f32 %v933_v7, %v1840_v22  ;;  %v1037_v52 = vsel %vm577_vm6, %v1033_v26, %v1036_v63  ;;  %v922_v10 = vmul.f32 %v919_v8, %v1845_v27  ;;  %v1061_v22 = vrot.slane %v965_v4, 4 }
 0x3d2   : > { %v1340_v15 = vpack.c.bf16 %v921_v6, %v1037_v52  ;;  %v1049_v3 = vsel %vm577_vm6, %v1046_v28, %v1048_v31  ;;  %v1350_v6 = vpack.c.bf16 %v1088_v47, %v2030_v58 }
 0x3d3   : > { %v1050_v18 = vrot.slane %v943_v48, 4  ;;  %v911_v21 = vpop.permute.xlu0 %910  ;;  %v989_v23 = vpop.permute.xlu1 %988  ;;  %v1086_v27 = vsel %vm577_vm6, %v922_v10, %v1046_v28  ;;  %v1089_v41 = vsel %vm577_vm6, %v947_v19, %v1061_v22 }
 0x3d4   : > { %v913_v33 = vsel %vm412_vm2, %v909_v30, %v911_v21  ;;  %1341 = vmatprep.subr.bf16.mxu0 %v1340_v15  ;;  %v1346_v20 = vpack.c.bf16 %v1049_v3, %v1086_v27  ;;  %v1348_v36 = vpack.c.bf16 %v1089_v41, %v2025_v11  ;;  %v996_v14 = vsel %vm513_vm5, %v989_v23, %v2103_v57 }
 0x3d5   : > { %v923_v26 = vmul.f32 %v913_v33, %v1849_v29  ;;  %1343 = vmatpush1.bf16.msra.mxu0 %v1342_v25  ;;  %v1051_v12 = vsel %vm577_vm6, %v1047_v34, %v1050_v18  ;;  %v1004_v1 = vmul.f32 %v996_v14, %v1881_v60 }
 0x3d7   : > { %v993_v38 = vpop.permute.xlu0 %992  ;;  %v955_v40 = vpop.permute.xlu1 %954  ;;  %v1087_v2 = vsel %vm577_vm6, %v923_v26, %v1047_v34  ;;  %v1074_v15 = vrot.slane %v1004_v1, 4 }
 0x3d8   : > { %v957_v42 = vsel %vm469_vm4, %v2107_v0, %v955_v40  ;;  %v963_v29 = vsel %vm469_vm4, %v955_v40, 0.0  ;;  %v1344_v43 = vpack.c.bf16 %v1051_v12, %v1087_v2  ;;  %v1002_v0 = vsel %vm513_vm5, %v2103_v57, 0.0  ;;  %v1092_v40 = vld [vmem:[%s2261_s4] sm:$0xf] }
 0x3d9   : > { %v966_v45 = vmul.f32 %v957_v42, %v1884_v61  ;;  %v967_v46 = vmul.f32 %v963_v29, %v1873_v53  ;;  %v976_v53 = vsel %vm491_vm7, %v2099_v50, %v2101_v55  ;;  %v985_v61 = vmul.f32 %v982_v13, %v1906_v24 }
 0x3da   : > { %1345 = vmatprep.subr.bf16.mxu0 %v1344_v43  ;;  %v1005_v63 = vmul.f32 %v1002_v0, %v1876_v56  ;;  %v984_v50 = vmul.f32 %v976_v53, %v1900_v17 }
 0x3db   : > { %v1062_v32 = vrot.slane %v966_v45, 4  ;;  %v1064_v51 = vrot.slane %v967_v46, 4  ;;  %v973_v54 = vpop.permute.xlu0 %972  ;;  %1347 = vmatpush1.bf16.msra.mxu0 %v1346_v20  ;;  %v975_v62 = vpop.permute.xlu1 %974 }
 0x3dc   : > { %1349 = vmatprep.subr.bf16.mxu0 %v1348_v36  ;;  %v977_v11 = vsel %vm491_vm7, %v973_v54, %v975_v62  ;;  %v983_v49 = vsel %vm491_vm7, %v975_v62, 0.0  ;;  %v1075_v10 = vrot.slane %v1005_v63, 4 }
 0x3dd   : > { %v1065_v57 = vsel %vm577_vm6, %v1061_v22, %v1064_v51  ;;  %v1063_v5 = vsel %vm577_vm6, %v1060_v37, %v1062_v32  ;;  %v986_v8 = vmul.f32 %v977_v11, %v1900_v17  ;;  %v987_v9 = vmul.f32 %v983_v49, %v1906_v24 }
 0x3de   : > { %v1352_v30 = vpack.c.bf16 %v985_v61, %v1065_v57  ;;  %v1354_v52 = vpack.c.bf16 %v984_v50, %v1063_v5 }
 0x3df   : > { %v995_v55 = vpop.permute.xlu0 %994  ;;  %v1011_v7 = vpop.permute.xlu1 %1010  ;;  %1351 = vmatpush1.bf16.msra.mxu0 %v1350_v6  ;;  %v1091_v25 = vsel %vm577_vm6, %v987_v9, %v1075_v10  ;;  %v1090_v19 = vsel %vm577_vm6, %v986_v8, %v1074_v15 }
 0x3e0   : > { %v997_v58 = vsel %vm513_vm5, %v993_v38, %v995_v55  ;;  %v1003_v4 = vsel %vm513_vm5, %v995_v55, 0.0  ;;  %1353 = vmatprep.subr.bf16.mxu0 %v1352_v30  ;;  %v1022_v16 = vsel %vm535_vm8, %v1011_v7, 0.0 }
 0x3e1   : > { %v1006_v59 = vmul.f32 %v997_v58, %v1881_v60  ;;  %v1007_v48 = vmul.f32 %v1003_v4, %v1876_v56  ;;  %v1025_v60 = vmul.f32 %v1022_v16, %v1915_v39 }
 0x3e3   : > { %v1076_v18 = vrot.slane %v1006_v59, 4  ;;  %v1078_v21 = vrot.slane %v1007_v48, 4  ;;  %v1015_v23 = vpop.permute.xlu0 %1014  ;;  %v1009_v17 = vpop.permute.xlu1 %1008  ;;  %1355 = vmatpush1.bf16.msra.mxu0 %v1354_v52 }
 0x3e4   : > { %v1023_v24 = vsel %vm535_vm8, %v1015_v23, 0.0  ;;  %v1016_v33 = vsel %vm535_vm8, %v1009_v17, %v1011_v7 }
 0x3e5   : > { %v1027_v56 = vmul.f32 %v1023_v24, %v1915_v39  ;;  %v1079_v28 = vsel %vm577_vm6, %v1075_v10, %v1078_v21  ;;  %v1077_v31 = vsel %vm577_vm6, %v1074_v15, %v1076_v18  ;;  %v1024_v37 = vmul.f32 %v1016_v33, %v1920_v44 }
 0x3e6   : > { %v1356_v22 = vpack.c.bf16 %v1079_v28, %v1091_v25  ;;  %v1358_v34 = vpack.c.bf16 %v1077_v31, %v1090_v19 }
 0x3e7   : > { %v1360_v26 = vpack.c.bf16 %v1027_v56, %v1025_v60  ;;  %v1013_v27 = vpop.permute.xlu0 %1012 }
 0x3e8   : > { %v1017_v35 = vsel %vm535_vm8, %v1013_v27, %v1015_v23  ;;  %1357 = vmatprep.subr.bf16.mxu0 %v1356_v22 }
 0x3e9   : > { %v1026_v39 = vmul.f32 %v1017_v35, %v1920_v44  ;;  %1359 = vmatpush1.bf16.msra.mxu0 %v1358_v34 }
 0x3ea   : > { %1362 = vmatprep.subr.msk.bf16.mxu0 %vm1361_vm12, %v1360_v26 }
 0x3eb   : > { %v1363_v38 = vpack.c.bf16 %v1026_v39, %v1024_v37 }
 0x3ed   : > { %1365 = vmatpush1.bf16.msk.msra.mxu0 %vm1361_vm12, %v1363_v38 }
 0x3f0   : > { %1304 = vmatmul.mubr.msk.f32.vlgmr.msra.gmra.mrb[0].mxu0 %vm1099_vm13, %v1092_v40 }
 0x3f4   : > { %v1097_v12 = vpop.permute.xlu1 %1096 }
 0x4c3   : > { %v1175_v2 = vpop.f32.mrb[0].mxu0 }
 0x4c4   : > { %v1176_v41 = vadd.f32 %v1175_v2, %v1097_v12  ;;  %v1177_v42 = vpop.f32.mrb[1].mxu0 }
 0x4c5   : > { %v1178_v29 = vadd.f32 %v1177_v42, %v1097_v12 }
 0x4c6   : > { %v1180_v44 = vmax.f32 %v1176_v41, 0.0 }
 0x4c7   : > { %v1181_v43 = vmax.f32 %v1178_v29, 0.0 }
 0x4c8   : > { %v1184_v3 = vrot.slane %v1180_v44, 4 }
 0x4c9   : > { %v1185_v13 = vrot.slane %v1181_v43, 4 }
 0x4ca   : > { %1188 = vst [vmem:[%s1781_s21 + $0x10] sm:$0xf0] %v1184_v3 }
 0x4cb   : > { %1189 = vst [vmem:[%s1781_s21 + $0x18] sm:$0xf0] %v1185_v13 }
 0x4cc   : > { %1511 = shalt.err (!%p1508_p7)
}
 0x4cd   : > { %s1512_s21 = scalar_lea.hbm %s2208_s10, 512  ;;  %s1516_s15 = scalar_lea.hbm %s2265_s8, 1024 }
 0x4ce   : > { %p1513_p9 = scmp.ne.s32.totalorder %s2208_s10, %s1512_s21  ;;  %p1517_p0 = scmp.lt.u32.totalorder %s2208_s10, %s2265_s8 }
 0x4cf   : > { %p1518_p1 = scmp.lt.u32.totalorder %s1516_s15, %s1512_s21  ;;  %p1520_p4 = scmp.lt.u32.totalorder %s1512_s21, %s2208_s10 }
 0x4d0   : > { %p1514_p2 = pnand %p1513_p9, %p1723_p12 }
 0x4d1   : > { %p1519_p11 = por %p1518_p1, %p1517_p0 }
 0x4d2   : > { %p1515_p5 = pneg %p1514_p2 }
 0x4d3   : > { %p1521_p6 = por %p1520_p4, %p1519_p11 }
 0x4d5   : > { %p1522_p8 = pnand %p1521_p6, %p1515_p5 }
 0x4d7   : > { %1525 = shalt.err (!%p1522_p8)
}
 0x4d8   : > { %s1586_s13 = smov 256  }
 0x4d9   : > { %1372 = dma.vmem_to_hbm [thread:$0]  (%p1723_p12), %s2210_s17, 512, %s2208_s10, %s1191_s16, %s1586_s13, %s1586_s13, %s1575_s18  }
 0x4da PF: > { %s1219_s9 = sand.u32 1, %s1556_s27   ;;  %p2283_p10 = scmp.ne.s32.totalorder %s2272_s12, 0 }
 0x4db   : > { %p2284_p13 = scmp.ge.s32.totalorder %s1568_s30, 2  ;;  %s1220_s11 = scalar_lea.sflag [#allocation4], %s1219_s9 }
 0x4dd   : > { %p1383_p3 = pnand %p2284_p13, %p2283_p10 }
 0x4df   : > { %1551 = dma.done.wait (!%p1383_p3), %s1220_s11, 512  }
 0x4e0   : > { %1553 = vsyncadd (!%p1383_p3), %s1220_s11, 4294966784  ;;  %s2285_s30 = sld [smem:[#allocation11_spill]]  ;;  %s2286_s27 = smov %s1560_s28 }
 0x4e1   : > { %s2287_s28 = smov %s1564_s29  ;;  %s2288_s29 = smov %s1719_s23 }
 0x4e6   : > { %p22_p7 = scmp.ge.s32.totalorder %s2285_s30, 4  }
 0x4e8   :  { %24 = sbr.rel (!%p22_p7) target bundleno = 6 (0x6), region = 109 }
 0x4ef   :  { %1225 = vsyncpa [#allocation3], 1 }
 0x4f0   :  { %1227 = vsyncpa [#allocation3 + $0x1], 1 }
 0x4f1   :  { %1228 = vsyncpa [#allocation6], 1 }
 0x4f2   :  { %1229 = vsyncpa [#allocation4], 1 }
 0x4f3   :  { %1231 = vsyncpa [#allocation4 + $0x1], 1 }

</bundles_post_ra>
